<compile_context>
chip_gen: v7x
topology: tpu7x:2x2x1
jax: 0.10.0
libtpu: 0.0.40
codegen_flags: <defaults>
</compile_context>

<pallas_src>
import math

import jax
import jax.numpy as jnp
from jax.experimental import pallas as pl
from jax.experimental.pallas import tpu as pltpu


def _cnn_news_kernel(x_ref, mask_ref, wc_ref, bc_ref, wp_ref, bp_ref, wq_ref,
                     mexp_ref, cnn_ref, news_ref):
    # x_ref    : (TM, L*E)  token embeddings (lane-dense)
    # mask_ref : (TM, L)    attention mask (1 = keep, 0 = pad)
    # wc_ref   : (L*E, L*H) banded conv weight (3 taps + position shifts)
    # bc_ref   : (1, L*H)   conv bias tiled over L
    # wp_ref   : (L*H, L*H) block-diagonal newsProject weight
    # bp_ref   : (1, L*H)   newsProject bias tiled over L
    # wq_ref   : (L*H, L*H) block-diagonal (news_query / sqrt(H)) replicator
    # mexp_ref : (L, L*H)   0/1 expander: mask position l -> lanes [l*H,(l+1)*H)
    # cnn_ref  : (TM, L*H)  conv output (lane-dense store)
    # news_ref : (TM, H)    attention-pooled news embedding
    H = news_ref.shape[-1]
    LH = cnn_ref.shape[-1]

    x = x_ref[...].astype(jnp.float32)

    # Conv1d(kernel=3, padding=1) + bias + ReLU as one banded MXU matmul.
    c = jnp.dot(x, wc_ref[...], preferred_element_type=jnp.float32) + bc_ref[...]
    c = jnp.maximum(c, 0.0)                                  # (TM, L*H)

    # key = Tanh(newsProject(c)) via the block-diagonal projection weight.
    k = jnp.tanh(jnp.dot(c, wp_ref[...], preferred_element_type=jnp.float32)
                 + bp_ref[...])                              # (TM, L*H)

    # Scaled dot-product scores, replicated across every H-lane group, plus a
    # large-but-finite additive mask penalty (no NaN if a row is fully padded).
    s = jnp.dot(k, wq_ref[...], preferred_element_type=jnp.float32)
    s = s + jnp.dot((mask_ref[...] - 1.0) * 1e30, mexp_ref[...],
                    preferred_element_type=jnp.float32)      # (TM, L*H)

    # Masked softmax over the L positions (groups of H lanes).
    m = jnp.max(s, axis=-1, keepdims=True)                   # per-row max
    e = jnp.exp(s - m)                                       # masked lanes -> 0
    num = e * c
    den = e
    # log2(L) lane-rotate tree: every lane ends up holding the full sum over l.
    shift = H
    while shift < LH:
        num = num + pltpu.roll(num, shift, axis=1)
        den = den + pltpu.roll(den, shift, axis=1)
        shift *= 2
    news = num * pl.reciprocal(den, approx=True)             # (TM, L*H)

    cnn_ref[...] = c.astype(cnn_ref.dtype)
    news_ref[...] = news[:, :H].astype(news_ref.dtype)


def _round_up(x, m):
    return (x + m - 1) // m * m


def cnn_news_encoder_pallas(token_embedding, attn_mask, wconv, bconv, wproj,
                            bproj, query, *, block_m=256,
                            io_dtype=jnp.float32):
    """token_embedding: (..., L, E) f32; attn_mask: (..., L) int.
    Returns (cnn_output (..., L, H), news_embedding (..., H))."""
    orig_shape = attn_mask.shape
    L = int(orig_shape[-1])
    E = int(token_embedding.shape[-1])
    H = int(wconv.shape[-1])
    assert L & (L - 1) == 0, "lane-rotate softmax tree assumes power-of-two seq_len"

    M = math.prod(orig_shape[:-1])
    x = token_embedding.reshape(M, L * E).astype(io_dtype)
    mask = attn_mask.reshape(M, L).astype(jnp.float32)

    # Block of TM sequences per grid step (multiple of 16 so bf16 tiles fit).
    tm = min(block_m, _round_up(M, 16))
    m_pad = _round_up(M, tm)
    if m_pad != M:
        x = jnp.pad(x, ((0, m_pad - M), (0, 0)))
        mask = jnp.pad(mask, ((0, m_pad - M), (0, 0)))   # padded rows fully masked

    f32 = jnp.float32
    eye = jnp.eye(L, dtype=f32)
    # Banded conv weight: output position t pulls tap0 from t-1, tap1 from t,
    # tap2 from t+1 (the zero padding is simply the missing off-band blocks).
    w_conv = (jnp.kron(jnp.eye(L, k=1, dtype=f32), wconv[0].astype(f32))
              + jnp.kron(eye, wconv[1].astype(f32))
              + jnp.kron(jnp.eye(L, k=-1, dtype=f32), wconv[2].astype(f32)))
    b_conv = jnp.tile(bconv.reshape(1, H).astype(f32), (1, L))
    w_proj = jnp.kron(eye, wproj.astype(f32))
    b_proj = jnp.tile(bproj.reshape(1, H).astype(f32), (1, L))
    # Per-position score replicator: column block l holds query/sqrt(H) in all
    # H columns, so scores land replicated across that position's lane group.
    q_block = (query.reshape(H, 1).astype(f32) / math.sqrt(H)) * jnp.ones((1, H), f32)
    w_query = jnp.kron(eye, q_block)
    m_exp = jnp.kron(eye, jnp.ones((1, H), f32))

    grid = (m_pad // tm,)
    cnn_flat, news = pl.pallas_call(
        _cnn_news_kernel,
        out_shape=(
            jax.ShapeDtypeStruct((m_pad, L * H), jnp.float32),
            jax.ShapeDtypeStruct((m_pad, H), jnp.float32),
        ),
        grid_spec=pltpu.PrefetchScalarGridSpec(
            num_scalar_prefetch=0,
            grid=grid,
            in_specs=[
                pl.BlockSpec((tm, L * E), lambda i: (i, 0)),     # embeddings
                pl.BlockSpec((tm, L), lambda i: (i, 0)),         # mask
                pl.BlockSpec((L * E, L * H), lambda i: (0, 0)),  # conv weight
                pl.BlockSpec((1, L * H), lambda i: (0, 0)),      # conv bias
                pl.BlockSpec((L * H, L * H), lambda i: (0, 0)),  # proj weight
                pl.BlockSpec((1, L * H), lambda i: (0, 0)),      # proj bias
                pl.BlockSpec((L * H, L * H), lambda i: (0, 0)),  # query weight
                pl.BlockSpec((L, L * H), lambda i: (0, 0)),      # mask expander
            ],
            out_specs=[
                pl.BlockSpec((tm, L * H), lambda i: (i, 0)),
                pl.BlockSpec((tm, H), lambda i: (i, 0)),
            ],
        ),
        compiler_params=pltpu.CompilerParams(
            dimension_semantics=("parallel",)),
    )(x, mask, w_conv, b_conv, w_proj, b_proj, w_query, m_exp)

    cnn_out = cnn_flat[:M].reshape(*orig_shape, H)
    news_emb = news[:M].reshape(*orig_shape[:-1], H)
    return cnn_out, news_emb


def reference(token_embedding, attn_mask, wconv, bconv, wproj, bproj, query):
    """Pure-JAX reference mirroring the PyTorch forward."""
    orig_shape = attn_mask.shape
    L = orig_shape[-1]
    E = token_embedding.shape[-1]
    H = wconv.shape[-1]
    x = token_embedding.reshape(-1, L, E)
    mask = attn_mask.reshape(-1, L)

    xp = jnp.pad(x, ((0, 0), (1, 1), (0, 0)))
    c = (jnp.einsum('mle,eh->mlh', xp[:, :-2], wconv[0])
         + jnp.einsum('mle,eh->mlh', xp[:, 1:-1], wconv[1])
         + jnp.einsum('mle,eh->mlh', xp[:, 2:], wconv[2]) + bconv)
    c = jnp.maximum(c, 0.0)
    k = jnp.tanh(jnp.einsum('mlh,hg->mlg', c, wproj) + bproj)
    scores = jnp.einsum('qh,mlh->mql', query, k) / math.sqrt(H)
    scores = jnp.where(mask[:, None, :] == 0, -jnp.inf, scores)
    attn = jax.nn.softmax(scores, axis=-1)
    news = jnp.einsum('mql,mlh->mqh', attn, c)[:, 0]
    return c.reshape(*orig_shape, H), news.reshape(*orig_shape[:-1], H)


if __name__ == "__main__":
    # Small, forward-consistent shapes: batch=2, num_news=3, seq_len=8,
    # plm (embedding) dim E=32, hidden_dim H=32, vocab=64.
    B, N, L, E, H, V = 2, 3, 8, 32, 32, 64

    key = jax.random.PRNGKey(0)
    k_emb, k_tok, k_cw, k_pw, k_q, k_pb = jax.random.split(key, 6)

    embedding_table = jax.random.normal(k_emb, (V, E), jnp.float32) * 0.02
    # Conv1d(E -> H, kernel=3): torch weight (H, E, 3) -> tap layout (3, E, H)
    std_conv = math.sqrt(2.0 / (E * 3 + H * 3))
    wconv_torch = jax.random.normal(k_cw, (H, E, 3), jnp.float32) * std_conv
    wconv = jnp.transpose(wconv_torch, (2, 1, 0))            # (3, E, H)
    bconv = jnp.zeros((1, H), jnp.float32)
    # newsProject Linear(H -> H): torch weight (H, H); y = x @ W^T + b
    std_proj = math.sqrt(2.0 / (H + H))
    wproj_torch = jax.random.normal(k_pw, (H, H), jnp.float32) * std_proj
    wproj = wproj_torch.T                                    # (H, H) for x @ W
    bproj = jax.random.normal(k_pb, (1, H), jnp.float32) * 0.01
    std_q = math.sqrt(2.0 / (1 + H))
    query = jax.random.normal(k_q, (1, H), jnp.float32) * std_q

    token_id = jax.random.randint(k_tok, (B, N, L), 0, V, jnp.int32)
    lengths = 4 + (jnp.arange(B * N).reshape(B, N) % (L - 3))
    attn_mask = (jnp.arange(L)[None, None, :] < lengths[..., None]).astype(jnp.int32)

    # Embedding lookup (gather) stays as plain-JAX glue around the kernel.
    token_embedding = embedding_table[token_id]              # (B, N, L, E)
    # TODO(synk): token_weight is optional (None) in the reference forward; if
    # provided it would just scale token_embedding here before the kernel.

    cnn_out, news_emb = cnn_news_encoder_pallas(
        token_embedding, attn_mask, wconv, bconv, wproj, bproj, query)
    jax.block_until_ready((cnn_out, news_emb))

    ref_cnn, ref_news = reference(
        token_embedding, attn_mask, wconv, bconv, wproj, bproj, query)

    assert cnn_out.shape == (B, N, L, H)
    assert news_emb.shape == (B, N, H)
    assert jnp.allclose(cnn_out, ref_cnn, atol=1e-5, rtol=1e-4), \
        float(jnp.max(jnp.abs(cnn_out - ref_cnn)))
    # news goes through the EUP approximate reciprocal -> slightly looser.
    assert jnp.allclose(news_emb, ref_news, atol=1e-4, rtol=1e-2), \
        float(jnp.max(jnp.abs(news_emb - ref_news)))

    # bf16-on-the-wire variant (halves HBM read traffic on v6e/v7x); compute
    # stays f32 in-kernel so only input rounding error shows up.
    cnn_bf16, news_bf16 = cnn_news_encoder_pallas(
        token_embedding, attn_mask, wconv, bconv, wproj, bproj, query,
        io_dtype=jnp.bfloat16)
    jax.block_until_ready((cnn_bf16, news_bf16))
    assert jnp.allclose(cnn_bf16, ref_cnn, atol=5e-3, rtol=5e-2)
    assert jnp.allclose(news_bf16, ref_news, atol=5e-3, rtol=5e-2)

    print("KERNEL_OK")
</pallas_src>

<mosaic_0001>
module attributes {stable_mosaic.version = 11 : i64} {
  func.func @_cnn_news_kernel(%arg0: i32, %arg1: memref<16x256xf32, #tpu.memory_space<vmem>>, %arg2: memref<16x8xf32, #tpu.memory_space<vmem>>, %arg3: memref<256x256xf32, #tpu.memory_space<vmem>>, %arg4: memref<1x256xf32, #tpu.memory_space<vmem>>, %arg5: memref<256x256xf32, #tpu.memory_space<vmem>>, %arg6: memref<1x256xf32, #tpu.memory_space<vmem>>, %arg7: memref<256x256xf32, #tpu.memory_space<vmem>>, %arg8: memref<8x256xf32, #tpu.memory_space<vmem>>, %arg9: memref<16x256xf32, #tpu.memory_space<vmem>>, %arg10: memref<16x32xf32, #tpu.memory_space<vmem>>) attributes {dimension_semantics = [#tpu.dimension_semantics<parallel>], iteration_bounds = array<i64: 1>, scalar_prefetch = 0 : i64, scratch_operands = 0 : i64, tpu.core_type = #tpu.core_type<tc>, window_params = [{transform_indices = @transform_0, window_bounds = array<i64: 16, 256>}, {transform_indices = @transform_1, window_bounds = array<i64: 16, 8>}, {pipeline_mode = #tpu.pipeline_mode<synchronous>, transform_indices = @transform_2, window_bounds = array<i64: 256, 256>}, {pipeline_mode = #tpu.pipeline_mode<synchronous>, transform_indices = @transform_3, window_bounds = array<i64: 1, 256>}, {pipeline_mode = #tpu.pipeline_mode<synchronous>, transform_indices = @transform_4, window_bounds = array<i64: 256, 256>}, {pipeline_mode = #tpu.pipeline_mode<synchronous>, transform_indices = @transform_5, window_bounds = array<i64: 1, 256>}, {pipeline_mode = #tpu.pipeline_mode<synchronous>, transform_indices = @transform_6, window_bounds = array<i64: 256, 256>}, {pipeline_mode = #tpu.pipeline_mode<synchronous>, transform_indices = @transform_7, window_bounds = array<i64: 8, 256>}, {transform_indices = @transform_8, window_bounds = array<i64: 16, 256>}, {transform_indices = @transform_9, window_bounds = array<i64: 16, 32>}]} {
    %c0 = arith.constant 0 : index
    %c0_0 = arith.constant 0 : index
    %0 = vector.load %arg1[%c0, %c0_0] : memref<16x256xf32, #tpu.memory_space<vmem>>, vector<16x256xf32>
    %c0_1 = arith.constant 0 : index
    %c0_2 = arith.constant 0 : index
    %1 = vector.load %arg3[%c0_1, %c0_2] : memref<256x256xf32, #tpu.memory_space<vmem>>, vector<256x256xf32>
    %cst = arith.constant dense<0.000000e+00> : vector<16x256xf32>
    %2 = tpu.matmul %0, %1, %cst {dimension_numbers = #tpu.dot_dimension_numbers<[1], [0], [0], [1], [0, 0, 1, 1], [], []>} : vector<16x256xf32>, vector<256x256xf32>, vector<16x256xf32> -> vector<16x256xf32>
    %c0_3 = arith.constant 0 : index
    %c0_4 = arith.constant 0 : index
    %3 = vector.load %arg4[%c0_3, %c0_4] : memref<1x256xf32, #tpu.memory_space<vmem>>, vector<1x256xf32>
    %4 = vector.broadcast %3 : vector<1x256xf32> to vector<16x256xf32>
    %5 = arith.addf %2, %4 : vector<16x256xf32>
    %cst_5 = arith.constant 0.000000e+00 : f32
    %6 = vector.broadcast %cst_5 : f32 to vector<16x256xf32>
    %7 = arith.maximumf %5, %6 : vector<16x256xf32>
    %c0_6 = arith.constant 0 : index
    %c0_7 = arith.constant 0 : index
    %8 = vector.load %arg5[%c0_6, %c0_7] : memref<256x256xf32, #tpu.memory_space<vmem>>, vector<256x256xf32>
    %cst_8 = arith.constant dense<0.000000e+00> : vector<16x256xf32>
    %9 = tpu.matmul %7, %8, %cst_8 {dimension_numbers = #tpu.dot_dimension_numbers<[1], [0], [0], [1], [0, 0, 1, 1], [], []>} : vector<16x256xf32>, vector<256x256xf32>, vector<16x256xf32> -> vector<16x256xf32>
    %c0_9 = arith.constant 0 : index
    %c0_10 = arith.constant 0 : index
    %10 = vector.load %arg6[%c0_9, %c0_10] : memref<1x256xf32, #tpu.memory_space<vmem>>, vector<1x256xf32>
    %11 = vector.broadcast %10 : vector<1x256xf32> to vector<16x256xf32>
    %12 = arith.addf %9, %11 : vector<16x256xf32>
    %13 = math.tanh %12 : vector<16x256xf32>
    %c0_11 = arith.constant 0 : index
    %c0_12 = arith.constant 0 : index
    %14 = vector.load %arg7[%c0_11, %c0_12] : memref<256x256xf32, #tpu.memory_space<vmem>>, vector<256x256xf32>
    %cst_13 = arith.constant dense<0.000000e+00> : vector<16x256xf32>
    %15 = tpu.matmul %13, %14, %cst_13 {dimension_numbers = #tpu.dot_dimension_numbers<[1], [0], [0], [1], [0, 0, 1, 1], [], []>} : vector<16x256xf32>, vector<256x256xf32>, vector<16x256xf32> -> vector<16x256xf32>
    %c0_14 = arith.constant 0 : index
    %c0_15 = arith.constant 0 : index
    %16 = vector.load %arg2[%c0_14, %c0_15] : memref<16x8xf32, #tpu.memory_space<vmem>>, vector<16x8xf32>
    %cst_16 = arith.constant 1.000000e+00 : f32
    %17 = vector.broadcast %cst_16 : f32 to vector<16x8xf32>
    %18 = arith.subf %16, %17 : vector<16x8xf32>
    %cst_17 = arith.constant 1.000000e+30 : f32
    %19 = vector.broadcast %cst_17 : f32 to vector<16x8xf32>
    %20 = arith.mulf %18, %19 : vector<16x8xf32>
    %c0_18 = arith.constant 0 : index
    %c0_19 = arith.constant 0 : index
    %21 = vector.load %arg8[%c0_18, %c0_19] : memref<8x256xf32, #tpu.memory_space<vmem>>, vector<8x256xf32>
    %cst_20 = arith.constant dense<0.000000e+00> : vector<16x256xf32>
    %22 = tpu.matmul %20, %21, %cst_20 {dimension_numbers = #tpu.dot_dimension_numbers<[1], [0], [0], [1], [0, 0, 1, 1], [], []>} : vector<16x8xf32>, vector<8x256xf32>, vector<16x256xf32> -> vector<16x256xf32>
    %23 = arith.addf %15, %22 : vector<16x256xf32>
    %cst_21 = arith.constant dense<0xFF800000> : vector<16xf32>
    %24 = vector.multi_reduction <maximumf>, %23, %cst_21 [1] : vector<16x256xf32> to vector<16xf32>
    %25 = vector.shape_cast %24 : vector<16xf32> to vector<16x1xf32>
    %26 = vector.broadcast %25 : vector<16x1xf32> to vector<16x256xf32>
    %27 = arith.subf %23, %26 : vector<16x256xf32>
    %28 = math.exp %27 : vector<16x256xf32>
    %29 = arith.mulf %28, %7 : vector<16x256xf32>
    %c32_i32 = arith.constant 32 : i32
    %30 = tpu.dynamic_rotate %29 by %c32_i32 dim 1 : vector<16x256xf32>, i32 -> vector<16x256xf32>
    %31 = arith.addf %29, %30 : vector<16x256xf32>
    %c32_i32_22 = arith.constant 32 : i32
    %32 = tpu.dynamic_rotate %28 by %c32_i32_22 dim 1 : vector<16x256xf32>, i32 -> vector<16x256xf32>
    %33 = arith.addf %28, %32 : vector<16x256xf32>
    %c64_i32 = arith.constant 64 : i32
    %34 = tpu.dynamic_rotate %31 by %c64_i32 dim 1 : vector<16x256xf32>, i32 -> vector<16x256xf32>
    %35 = arith.addf %31, %34 : vector<16x256xf32>
    %c64_i32_23 = arith.constant 64 : i32
    %36 = tpu.dynamic_rotate %33 by %c64_i32_23 dim 1 : vector<16x256xf32>, i32 -> vector<16x256xf32>
    %37 = arith.addf %33, %36 : vector<16x256xf32>
    %c128_i32 = arith.constant 128 : i32
    %38 = tpu.dynamic_rotate %35 by %c128_i32 dim 1 : vector<16x256xf32>, i32 -> vector<16x256xf32>
    %39 = arith.addf %35, %38 : vector<16x256xf32>
    %c128_i32_24 = arith.constant 128 : i32
    %40 = tpu.dynamic_rotate %37 by %c128_i32_24 dim 1 : vector<16x256xf32>, i32 -> vector<16x256xf32>
    %41 = arith.addf %37, %40 : vector<16x256xf32>
    %42 = tpu.reciprocal %41 {approx = true} : vector<16x256xf32> -> vector<16x256xf32>
    %43 = arith.mulf %39, %42 : vector<16x256xf32>
    %c0_25 = arith.constant 0 : index
    %c0_26 = arith.constant 0 : index
    %44 = vector.load %arg9[%c0_25, %c0_26] : memref<16x256xf32, #tpu.memory_space<vmem>>, vector<16x256xf32>
    tpu.vector_store %arg9[%c0_25, %c0_26], %7 {strides = array<i32>} : memref<16x256xf32, #tpu.memory_space<vmem>>, vector<16x256xf32>,
    %45 = vector.extract_strided_slice %43 {offsets = [0, 0], sizes = [16, 32], strides = [1, 1]} : vector<16x256xf32> to vector<16x32xf32>
    %c0_27 = arith.constant 0 : index
    %c0_28 = arith.constant 0 : index
    %46 = vector.load %arg10[%c0_27, %c0_28] : memref<16x32xf32, #tpu.memory_space<vmem>>, vector<16x32xf32>
    tpu.vector_store %arg10[%c0_27, %c0_28], %45 {strides = array<i32>} : memref<16x32xf32, #tpu.memory_space<vmem>>, vector<16x32xf32>,
    return
  }
  func.func @transform_0(%arg0: i32) -> (i32, i32) {
    %c0_i32 = arith.constant 0 : i32
    %c0_i32_0 = arith.constant 0 : i32
    return %arg0, %c0_i32 : i32, i32
  }
  func.func @transform_1(%arg0: i32) -> (i32, i32) {
    %c0_i32 = arith.constant 0 : i32
    %c0_i32_0 = arith.constant 0 : i32
    return %arg0, %c0_i32 : i32, i32
  }
  func.func @transform_2(%arg0: i32) -> (i32, i32) {
    %c0_i32 = arith.constant 0 : i32
    %c0_i32_0 = arith.constant 0 : i32
    %c0_i32_1 = arith.constant 0 : i32
    return %c0_i32, %c0_i32_0 : i32, i32
  }
  func.func @transform_3(%arg0: i32) -> (i32, i32) {
    %c0_i32 = arith.constant 0 : i32
    %c0_i32_0 = arith.constant 0 : i32
    %c0_i32_1 = arith.constant 0 : i32
    return %c0_i32, %c0_i32_0 : i32, i32
  }
  func.func @transform_4(%arg0: i32) -> (i32, i32) {
    %c0_i32 = arith.constant 0 : i32
    %c0_i32_0 = arith.constant 0 : i32
    %c0_i32_1 = arith.constant 0 : i32
    return %c0_i32, %c0_i32_0 : i32, i32
  }
  func.func @transform_5(%arg0: i32) -> (i32, i32) {
    %c0_i32 = arith.constant 0 : i32
    %c0_i32_0 = arith.constant 0 : i32
    %c0_i32_1 = arith.constant 0 : i32
    return %c0_i32, %c0_i32_0 : i32, i32
  }
  func.func @transform_6(%arg0: i32) -> (i32, i32) {
    %c0_i32 = arith.constant 0 : i32
    %c0_i32_0 = arith.constant 0 : i32
    %c0_i32_1 = arith.constant 0 : i32
    return %c0_i32, %c0_i32_0 : i32, i32
  }
  func.func @transform_7(%arg0: i32) -> (i32, i32) {
    %c0_i32 = arith.constant 0 : i32
    %c0_i32_0 = arith.constant 0 : i32
    %c0_i32_1 = arith.constant 0 : i32
    return %c0_i32, %c0_i32_0 : i32, i32
  }
  func.func @transform_8(%arg0: i32) -> (i32, i32) {
    %c0_i32 = arith.constant 0 : i32
    %c0_i32_0 = arith.constant 0 : i32
    return %arg0, %c0_i32 : i32, i32
  }
  func.func @transform_9(%arg0: i32) -> (i32, i32) {
    %c0_i32 = arith.constant 0 : i32
    %c0_i32_0 = arith.constant 0 : i32
    return %arg0, %c0_i32 : i32, i32
  }
}

</mosaic_0001>

<bundles_post_ra>
// kernel: tpu_custom_call.1
= control target key start
LH: loop header
LB: loop body
LE: loop exit
PB: predicated region body
PF: predicated region fallthrough
CT: control target
= control target key end

     0   :  { %15 = vsyncpa [#allocation3], 0  ;;  %s1408_s0 = inlined_call_operand.hbm [shape: f32[16,256], index: 0, kind: input, shape index: {}]   ;;  %s1409_s1 = inlined_call_operand.vmem [shape: f32[16,8], index: 1, kind: input, shape index: {}]   ;;  %s1410_s2 = inlined_call_operand.hbm [shape: f32[256,256], index: 2, kind: input, shape index: {}]   ;;  %s1411_s3 = inlined_call_operand.vmem [shape: f32[1,256], index: 3, kind: input, shape index: {}]   ;;  %s1412_s4 = inlined_call_operand.hbm [shape: f32[256,256], index: 4, kind: input, shape index: {}]   ;;  %s1413_s5 = inlined_call_operand.vmem [shape: f32[1,256], index: 5, kind: input, shape index: {}]   ;;  %s1414_s6 = inlined_call_operand.hbm [shape: f32[256,256], index: 6, kind: input, shape index: {}]   ;;  %s1415_s7 = inlined_call_operand.vmem [shape: f32[8,256], index: 7, kind: input, shape index: {}]   ;;  %s1416_s8 = inlined_call_operand.hbm [shape: f32[16,256], index: 8, kind: output, shape index: {0}]   ;;  %s1417_s9 = inlined_call_operand.hbm [shape: f32[16,32], index: 9, kind: output, shape index: {1}]  }
   0x1   :  { %16 = vsyncpa [#allocation6], 0 }
   0x2   :  { %17 = vsyncpa [#allocation9], 0 }
   0x3   :  { %18 = vsyncpa [#allocation4], 0 }
   0x4   :  { %19 = vsyncpa [#allocation12], 0  ;;  %s1154_s30 = smov [#allocation5]   ;;  %s1155_s11 = smov [#allocation2]  }
   0x5   :  { %s39_s10 = sshll.u32 %s1154_s30, 4  ;;  %s25_s12 = sshll.u32 %s1155_s11, 4  ;;  %s40_s10 = int_to_ptr.vmem [resolvable:$true] %s39_s10  ;;  %s1217_s12 = int_to_ptr.vmem [resolvable:$true] %s25_s12 }
   0x6   :  { %s1012_s15 = scalar_lea.hbm %s1410_s2, 8192 }
   0x7   :  { %p1013_p0 = scmp.ne.s32.totalorder %s1410_s2, %s1012_s15  ;;  %p1016_p1 = scmp.lt.u32.totalorder %s1012_s15, %s1410_s2 }
   0x9   :  { %p1018_p2 = pnand %p1016_p1, %p1013_p0 }
   0xb   :  { %1021 = shalt.err (!%p1018_p2)
}
   0xc   :  { %s1022_s20 = scalar_lea.vmem %s40_s10, 8192  ;;  %p1027_p4 = scmp.lt.s32.totalorder %s40_s10, %s40_s10 }
   0xd   :  { %p1023_p3 = scmp.ne.s32.totalorder %s40_s10, %s1022_s20  ;;  %p1028_p5 = scmp.lt.s32.totalorder %s1022_s20, %s1022_s20 }
   0xf   :  { %p1029_p6 = por %p1028_p5, %p1027_p4 }
  0x11   :  { %p1030_p7 = pnand %p1029_p6, %p1023_p3 }
  0x13   :  { %1033 = shalt.err (!%p1030_p7)
}
  0x14   :  { %s1156_s21 = smov 256   ;;  %s1157_s22 = smov 16  }
  0x15   :  { %45 = dma.hbm_to_vmem [thread:$0]  %s1410_s2, 8192, %s40_s10, [#allocation6], %s1156_s21, %s1156_s21, %s1157_s22  }
  0x16   :  { %s1034_s27 = scalar_lea.hbm %s1408_s0, 512 }
  0x17   :  { %p1035_p8 = scmp.ne.s32.totalorder %s1408_s0, %s1034_s27  ;;  %p1038_p9 = scmp.lt.u32.totalorder %s1034_s27, %s1408_s0 }
  0x19   :  { %p1040_p10 = pnand %p1038_p9, %p1035_p8 }
  0x1b   :  { %1043 = shalt.err (!%p1040_p10)
}
  0x1c   :  { %s1044_s13 = scalar_lea.vmem %s1217_s12, 512  ;;  %p1049_p12 = scmp.lt.s32.totalorder %s1217_s12, %s1217_s12 }
  0x1d   :  { %p1045_p11 = scmp.ne.s32.totalorder %s1217_s12, %s1044_s13  ;;  %p1050_p13 = scmp.lt.s32.totalorder %s1044_s13, %s1044_s13 }
  0x1f   :  { %p1051_p0 = por %p1050_p13, %p1049_p12 }
  0x21   :  { %p1052_p1 = pnand %p1051_p0, %p1045_p11 }
  0x23   :  { %1055 = shalt.err (!%p1052_p1)
}
  0x24   :  { %31 = dma.hbm_to_vmem [thread:$0]  %s1408_s0, 512, %s1217_s12, [#allocation3], %s1156_s21, %s1156_s21, %s1157_s22  }
  0x25   :  { %s1158_s14 = smov [#allocation7]   ;;  %s1159_s16 = smov [#allocation8]  }
  0x26   :  { %s53_s15 = sshll.u32 %s1158_s14, 4  ;;  %s67_s17 = sshll.u32 %s1159_s16, 4  ;;  %s54_s15 = int_to_ptr.vmem [resolvable:$true] %s53_s15  ;;  %s1254_s17 = int_to_ptr.vmem [resolvable:$true] %s67_s17 }
  0x27   :  { %s1056_s20 = scalar_lea.hbm %s1412_s4, 8192 }
  0x28   :  { %p1057_p2 = scmp.ne.s32.totalorder %s1412_s4, %s1056_s20  ;;  %p1060_p3 = scmp.lt.u32.totalorder %s1056_s20, %s1412_s4 }
  0x2a   :  { %p1062_p4 = pnand %p1060_p3, %p1057_p2 }
  0x2c   :  { %1065 = shalt.err (!%p1062_p4)
}
  0x2d   :  { %s1066_s0 = scalar_lea.vmem %s54_s15, 8192  ;;  %p1071_p6 = scmp.lt.s32.totalorder %s54_s15, %s54_s15 }
  0x2e   :  { %p1067_p5 = scmp.ne.s32.totalorder %s54_s15, %s1066_s0  ;;  %p1072_p7 = scmp.lt.s32.totalorder %s1066_s0, %s1066_s0 }
  0x30   :  { %p1073_p8 = por %p1072_p7, %p1071_p6 }
  0x32   :  { %p1074_p9 = pnand %p1073_p8, %p1067_p5 }
  0x34   :  { %1077 = shalt.err (!%p1074_p9)
}
  0x35   :  { %59 = dma.hbm_to_vmem [thread:$0]  %s1412_s4, 8192, %s54_s15, [#allocation6], %s1156_s21, %s1156_s21, %s1157_s22  }
  0x36   :  { %s1078_s30 = scalar_lea.hbm %s1414_s6, 8192 }
  0x37   :  { %p1079_p10 = scmp.ne.s32.totalorder %s1414_s6, %s1078_s30  ;;  %p1082_p11 = scmp.lt.u32.totalorder %s1078_s30, %s1414_s6 }
  0x39   :  { %p1084_p12 = pnand %p1082_p11, %p1079_p10 }
  0x3b   :  { %1087 = shalt.err (!%p1084_p12)
}
  0x3c   :  { %s1088_s14 = scalar_lea.vmem %s1254_s17, 8192  ;;  %p1093_p0 = scmp.lt.s32.totalorder %s1254_s17, %s1254_s17 }
  0x3d   :  { %p1089_p13 = scmp.ne.s32.totalorder %s1254_s17, %s1088_s14  ;;  %p1094_p1 = scmp.lt.s32.totalorder %s1088_s14, %s1088_s14 }
  0x3f   :  { %p1095_p2 = por %p1094_p1, %p1093_p0 }
  0x41   :  { %p1096_p3 = pnand %p1095_p2, %p1089_p13 }
  0x43   :  { %1099 = shalt.err (!%p1096_p3)
}
  0x44   :  { %73 = dma.hbm_to_vmem [thread:$0]  %s1414_s6, 8192, %s1254_s17, [#allocation9], %s1156_s21, %s1156_s21, %s1157_s22  }
  0x45   :  { %1144 = dma.done.wait [#allocation3], 512  }
  0x46   :  { %1145 = vsyncadd [#allocation3], 4294966784 }
  0x47   :  { %1146 = dma.done.wait [#allocation6], 16384  }
  0x48   :  { %1147 = vsyncadd [#allocation6], 4294950912 }
  0x49   :  { %1148 = dma.done.wait [#allocation9], 8192  }
  0x4a   :  { %1149 = vsyncadd [#allocation9], 4294959104  ;;  %v93_v0 = vld [vmem:[#allocation5 + $0x8] sm:$0xff]  ;;  %v95_v1 = vld [vmem:[#allocation5 + $0x18] sm:$0xff]  ;;  %vm478_vm0 = vcmask 64512   ;;  %s1163_s0 = smov [#allocation10]  }
  0x4b   :  { %v92_v2 = vld [vmem:[#allocation5] sm:$0xff]  ;;  %v783_v3 = vpack.c.bf16 %v95_v1, %v93_v0  ;;  %v94_v4 = vld [vmem:[#allocation5 + $0x10] sm:$0xff]  ;;  %v97_v5 = vld [vmem:[#allocation5 + $0x28] sm:$0xff]  ;;  %s749_s12 = sshll.u32 %s1163_s0, 4  ;;  %s750_s12 = int_to_ptr.vmem [resolvable:$true] %s749_s12 }
  0x4c   :  { %v99_v6 = vld [vmem:[#allocation5 + $0x38] sm:$0xff]  ;;  %v785_v7 = vpack.c.bf16 %v94_v4, %v92_v2  ;;  %v96_v9 = vld [vmem:[#allocation5 + $0x20] sm:$0xff]  ;;  %v98_v10 = vld [vmem:[#allocation5 + $0x30] sm:$0xff]  ;;  %s1100_s27 = scalar_lea.vmem %s750_s12, 512  ;;  %p1105_p5 = scmp.lt.s32.totalorder %s750_s12, %s750_s12 }
  0x4d   :  { %v787_v8 = vpack.c.bf16 %v99_v6, %v97_v5  ;;  %v101_v11 = vld [vmem:[#allocation5 + $0x48] sm:$0xff]  ;;  %784 = vmatprep.subr.bf16.mxu1 %v783_v3  ;;  %v103_v12 = vld [vmem:[#allocation5 + $0x58] sm:$0xff]  ;;  %v789_v13 = vpack.c.bf16 %v98_v10, %v96_v9  ;;  %v100_v15 = vld [vmem:[#allocation5 + $0x40] sm:$0xff]  ;;  %p1101_p4 = scmp.ne.s32.totalorder %s750_s12, %s1100_s27  ;;  %p1106_p6 = scmp.lt.s32.totalorder %s1100_s27, %s1100_s27 }
  0x4e   :  { %786 = vmatpush1.bf16.msra.mxu1 %v785_v7  ;;  %v791_v14 = vpack.c.bf16 %v103_v12, %v101_v11  ;;  %v102_v16 = vld [vmem:[#allocation5 + $0x50] sm:$0xff]  ;;  %v105_v17 = vld [vmem:[#allocation5 + $0x68] sm:$0xff]  ;;  %v107_v18 = vld [vmem:[#allocation5 + $0x78] sm:$0xff] }
  0x4f   :  { %788 = vmatprep.subr.bf16.mxu1 %v787_v8  ;;  %v793_v19 = vpack.c.bf16 %v102_v16, %v100_v15  ;;  %v795_v20 = vpack.c.bf16 %v107_v18, %v105_v17  ;;  %v104_v21 = vld [vmem:[#allocation5 + $0x60] sm:$0xff]  ;;  %v106_v22 = vld [vmem:[#allocation5 + $0x70] sm:$0xff]  ;;  %v109_v23 = vld [vmem:[#allocation5 + $0x88] sm:$0xff]  ;;  %p1107_p7 = por %p1106_p6, %p1105_p5 }
  0x50   :  { %v111_v24 = vld [vmem:[#allocation5 + $0x98] sm:$0xff]  ;;  %v797_v25 = vpack.c.bf16 %v106_v22, %v104_v21  ;;  %v108_v27 = vld [vmem:[#allocation5 + $0x80] sm:$0xff]  ;;  %v110_v28 = vld [vmem:[#allocation5 + $0x90] sm:$0xff] }
  0x51   :  { %v799_v26 = vpack.c.bf16 %v111_v24, %v109_v23  ;;  %v113_v29 = vld [vmem:[#allocation5 + $0xa8] sm:$0xff]  ;;  %v115_v30 = vld [vmem:[#allocation5 + $0xb8] sm:$0xff]  ;;  %v801_v31 = vpack.c.bf16 %v110_v28, %v108_v27  ;;  %v112_v33 = vld [vmem:[#allocation5 + $0xa0] sm:$0xff]  ;;  %p1108_p8 = pnand %p1107_p7, %p1101_p4 }
  0x52   :  { %790 = vmatpush1.bf16.msra.mxu1 %v789_v13  ;;  %v803_v32 = vpack.c.bf16 %v115_v30, %v113_v29  ;;  %v114_v34 = vld [vmem:[#allocation5 + $0xb0] sm:$0xff]  ;;  %v117_v35 = vld [vmem:[#allocation5 + $0xc8] sm:$0xff]  ;;  %v119_v36 = vld [vmem:[#allocation5 + $0xd8] sm:$0xff] }
  0x53   :  { %792 = vmatprep.subr.bf16.mxu1 %v791_v14  ;;  %v805_v37 = vpack.c.bf16 %v114_v34, %v112_v33  ;;  %v807_v38 = vpack.c.bf16 %v119_v36, %v117_v35  ;;  %v116_v39 = vld [vmem:[#allocation5 + $0xc0] sm:$0xff]  ;;  %v118_v40 = vld [vmem:[#allocation5 + $0xd0] sm:$0xff]  ;;  %v89_v41 = vld [vmem:[#allocation2 + $0x8] sm:$0xff] }
  0x54   :  { %v121_v42 = vld [vmem:[#allocation5 + $0xe8] sm:$0xff]  ;;  %v123_v43 = vld [vmem:[#allocation5 + $0xf8] sm:$0xff]  ;;  %232 = vmatprep.mubr.f32.mxu1 %v89_v41  ;;  %v809_v44 = vpack.c.bf16 %v118_v40, %v116_v39  ;;  %v120_v46 = vld [vmem:[#allocation5 + $0xe0] sm:$0xff] }
  0x55   :  { %v811_v45 = vpack.c.bf16 %v123_v43, %v121_v42  ;;  %v122_v47 = vld [vmem:[#allocation5 + $0xf0] sm:$0xff]  ;;  %v125_v48 = vld [vmem:[#allocation5 + $0x108] sm:$0xff]  ;;  %v127_v49 = vld [vmem:[#allocation5 + $0x118] sm:$0xff] }
  0x56   :  { %794 = vmatpush1.bf16.msra.mxu1 %v793_v19  ;;  %v813_v50 = vpack.c.bf16 %v122_v47, %v120_v46  ;;  %v815_v51 = vpack.c.bf16 %v127_v49, %v125_v48  ;;  %v124_v52 = vld [vmem:[#allocation5 + $0x100] sm:$0xff]  ;;  %v126_v53 = vld [vmem:[#allocation5 + $0x110] sm:$0xff]  ;;  %v129_v54 = vld [vmem:[#allocation5 + $0x128] sm:$0xff] }
  0x57   :  { %796 = vmatprep.subr.bf16.mxu1 %v795_v20  ;;  %v131_v55 = vld [vmem:[#allocation5 + $0x138] sm:$0xff]  ;;  %v817_v56 = vpack.c.bf16 %v126_v53, %v124_v52  ;;  %v128_v58 = vld [vmem:[#allocation5 + $0x120] sm:$0xff]  ;;  %v130_v59 = vld [vmem:[#allocation5 + $0x130] sm:$0xff] }
  0x58   :  { %v819_v57 = vpack.c.bf16 %v131_v55, %v129_v54  ;;  %v133_v60 = vld [vmem:[#allocation5 + $0x148] sm:$0xff]  ;;  %v135_v61 = vld [vmem:[#allocation5 + $0x158] sm:$0xff]  ;;  %v821_v62 = vpack.c.bf16 %v130_v59, %v128_v58  ;;  %v132_v0 = vld [vmem:[#allocation5 + $0x140] sm:$0xff] }
  0x59   :  { %v823_v63 = vpack.c.bf16 %v135_v61, %v133_v60  ;;  %v134_v1 = vld [vmem:[#allocation5 + $0x150] sm:$0xff]  ;;  %v137_v2 = vld [vmem:[#allocation5 + $0x168] sm:$0xff]  ;;  %v139_v3 = vld [vmem:[#allocation5 + $0x178] sm:$0xff] }
  0x5a   :  { %798 = vmatpush1.bf16.msra.mxu1 %v797_v25  ;;  %v825_v4 = vpack.c.bf16 %v134_v1, %v132_v0  ;;  %v827_v5 = vpack.c.bf16 %v139_v3, %v137_v2  ;;  %v136_v6 = vld [vmem:[#allocation5 + $0x160] sm:$0xff]  ;;  %v138_v7 = vld [vmem:[#allocation5 + $0x170] sm:$0xff]  ;;  %v141_v8 = vld [vmem:[#allocation5 + $0x188] sm:$0xff] }
  0x5b   :  { %800 = vmatprep.subr.bf16.mxu1 %v799_v26  ;;  %v143_v9 = vld [vmem:[#allocation5 + $0x198] sm:$0xff]  ;;  %v829_v10 = vpack.c.bf16 %v138_v7, %v136_v6  ;;  %v140_v12 = vld [vmem:[#allocation5 + $0x180] sm:$0xff]  ;;  %v142_v13 = vld [vmem:[#allocation5 + $0x190] sm:$0xff] }
  0x5c   :  { %v831_v11 = vpack.c.bf16 %v143_v9, %v141_v8  ;;  %v145_v14 = vld [vmem:[#allocation5 + $0x1a8] sm:$0xff]  ;;  %v147_v15 = vld [vmem:[#allocation5 + $0x1b8] sm:$0xff]  ;;  %v833_v16 = vpack.c.bf16 %v142_v13, %v140_v12  ;;  %v144_v18 = vld [vmem:[#allocation5 + $0x1a0] sm:$0xff] }
  0x5d   :  { %v835_v17 = vpack.c.bf16 %v147_v15, %v145_v14  ;;  %v146_v19 = vld [vmem:[#allocation5 + $0x1b0] sm:$0xff]  ;;  %v149_v20 = vld [vmem:[#allocation5 + $0x1c8] sm:$0xff]  ;;  %v151_v21 = vld [vmem:[#allocation5 + $0x1d8] sm:$0xff] }
  0x5e   :  { %802 = vmatpush1.bf16.msra.mxu1 %v801_v31  ;;  %v837_v22 = vpack.c.bf16 %v146_v19, %v144_v18  ;;  %v839_v23 = vpack.c.bf16 %v151_v21, %v149_v20  ;;  %v148_v24 = vld [vmem:[#allocation5 + $0x1c0] sm:$0xff]  ;;  %v150_v25 = vld [vmem:[#allocation5 + $0x1d0] sm:$0xff]  ;;  %v153_v26 = vld [vmem:[#allocation5 + $0x1e8] sm:$0xff] }
  0x5f   :  { %804 = vmatprep.subr.bf16.mxu1 %v803_v32  ;;  %v155_v27 = vld [vmem:[#allocation5 + $0x1f8] sm:$0xff]  ;;  %v841_v28 = vpack.c.bf16 %v150_v25, %v148_v24  ;;  %v152_v30 = vld [vmem:[#allocation5 + $0x1e0] sm:$0xff]  ;;  %v154_v31 = vld [vmem:[#allocation5 + $0x1f0] sm:$0xff] }
  0x60   :  { %v843_v29 = vpack.c.bf16 %v155_v27, %v153_v26  ;;  %v250_v32 = vld [vmem:[#allocation7 + $0x8] sm:$0xff]  ;;  %v252_v33 = vld [vmem:[#allocation7 + $0x18] sm:$0xff]  ;;  %v845_v34 = vpack.c.bf16 %v154_v31, %v152_v30  ;;  %v249_v36 = vld [vmem:[#allocation7] sm:$0xff] }
  0x61   :  { %v847_v35 = vpack.c.bf16 %v252_v33, %v250_v32  ;;  %v256_v39 = vld [vmem:[#allocation7 + $0x38] sm:$0xff]  ;;  %v88_v40 = vld [vmem:[#allocation2] sm:$0xff]  ;;  %v258_v46 = vld [vmem:[#allocation7 + $0x48] sm:$0xff] }
  0x62   :  { %806 = vmatpush1.bf16.msra.mxu1 %v805_v37  ;;  %v251_v37 = vld [vmem:[#allocation7 + $0x10] sm:$0xff]  ;;  %v91_v42 = vld [vmem:[#allocation2 + $0x18] sm:$0xff]  ;;  %v262_v53 = vld [vmem:[#allocation7 + $0x68] sm:$0xff] }
  0x63   :  { %808 = vmatprep.subr.bf16.mxu1 %v807_v38  ;;  %v254_v38 = vld [vmem:[#allocation7 + $0x28] sm:$0xff]  ;;  %v849_v41 = vpack.c.bf16 %v251_v37, %v249_v36  ;;  %v260_v47 = vld [vmem:[#allocation7 + $0x58] sm:$0xff]  ;;  %v90_v48 = vld [vmem:[#allocation2 + $0x10] sm:$0xff] }
  0x64   :  { %v851_v43 = vpack.c.bf16 %v256_v39, %v254_v38  ;;  %v259_v52 = vld [vmem:[#allocation7 + $0x50] sm:$0xff]  ;;  %v264_v54 = vld [vmem:[#allocation7 + $0x78] sm:$0xff]  ;;  %v266_v59 = vld [vmem:[#allocation7 + $0x88] sm:$0xff] }
  0x65   :  { %v263_v58 = vld [vmem:[#allocation7 + $0x70] sm:$0xff]  ;;  %v268_v60 = vld [vmem:[#allocation7 + $0x98] sm:$0xff]  ;;  %v270_v1 = vld [vmem:[#allocation7 + $0xa8] sm:$0xff] }
  0x66   :  { %810 = vmatpush1.bf16.msra.mxu1 %v809_v44  ;;  %v253_v44 = vld [vmem:[#allocation7 + $0x20] sm:$0xff]  ;;  %v267_v0 = vld [vmem:[#allocation7 + $0x90] sm:$0xff]  ;;  %v272_v2 = vld [vmem:[#allocation7 + $0xb8] sm:$0xff] }
  0x67   :  { %812 = vmatprep.subr.bf16.mxu1 %v811_v45  ;;  %v255_v45 = vld [vmem:[#allocation7 + $0x30] sm:$0xff]  ;;  %v274_v7 = vld [vmem:[#allocation7 + $0xc8] sm:$0xff]  ;;  %v276_v8 = vld [vmem:[#allocation7 + $0xd8] sm:$0xff] }
  0x68   :  { %v853_v49 = vpack.c.bf16 %v255_v45, %v253_v44  ;;  %v271_v6 = vld [vmem:[#allocation7 + $0xb0] sm:$0xff]  ;;  %v278_v13 = vld [vmem:[#allocation7 + $0xe8] sm:$0xff]  ;;  %v280_v14 = vld [vmem:[#allocation7 + $0xf8] sm:$0xff] }
  0x69   :  { %v275_v12 = vld [vmem:[#allocation7 + $0xd0] sm:$0xff]  ;;  %v282_v19 = vld [vmem:[#allocation7 + $0x108] sm:$0xff]  ;;  %v284_v20 = vld [vmem:[#allocation7 + $0x118] sm:$0xff] }
  0x6a   :  { %814 = vmatpush1.bf16.msra.mxu1 %v813_v50  ;;  %v855_v50 = vpack.c.bf16 %v260_v47, %v258_v46  ;;  %v279_v18 = vld [vmem:[#allocation7 + $0xf0] sm:$0xff]  ;;  %v286_v25 = vld [vmem:[#allocation7 + $0x128] sm:$0xff]  ;;  %v288_v26 = vld [vmem:[#allocation7 + $0x138] sm:$0xff] }
  0x6b   :  { %816 = vmatprep.subr.bf16.mxu1 %v815_v51  ;;  %v257_v51 = vld [vmem:[#allocation7 + $0x40] sm:$0xff]  ;;  %v283_v24 = vld [vmem:[#allocation7 + $0x110] sm:$0xff]  ;;  %v290_v31 = vld [vmem:[#allocation7 + $0x148] sm:$0xff] }
  0x6c   :  { %v857_v55 = vpack.c.bf16 %v259_v52, %v257_v51  ;;  %v287_v30 = vld [vmem:[#allocation7 + $0x130] sm:$0xff]  ;;  %v292_v32 = vld [vmem:[#allocation7 + $0x158] sm:$0xff]  ;;  %v294_v37 = vld [vmem:[#allocation7 + $0x168] sm:$0xff] }
  0x6d   :  { %v291_v36 = vld [vmem:[#allocation7 + $0x150] sm:$0xff]  ;;  %v296_v38 = vld [vmem:[#allocation7 + $0x178] sm:$0xff]  ;;  %v297_v47 = vld [vmem:[#allocation7 + $0x180] sm:$0xff] }
  0x6e   :  { %818 = vmatpush1.bf16.msra.mxu1 %v817_v56  ;;  %v859_v56 = vpack.c.bf16 %v264_v54, %v262_v53  ;;  %v300_v44 = vld [vmem:[#allocation7 + $0x198] sm:$0xff]  ;;  %v301_v53 = vld [vmem:[#allocation7 + $0x1a0] sm:$0xff]  ;;  %v303_v54 = vld [vmem:[#allocation7 + $0x1b0] sm:$0xff] }
  0x6f   :  { %820 = vmatprep.subr.bf16.mxu1 %v819_v57  ;;  %v261_v57 = vld [vmem:[#allocation7 + $0x60] sm:$0xff] }
  0x70   :  { %v861_v61 = vpack.c.bf16 %v263_v58, %v261_v57  ;;  %v901_v57 = vpack.c.bf16 %v303_v54, %v301_v53 }
  0x72   :  { %822 = vmatpush1.bf16.msra.mxu1 %v821_v62  ;;  %v863_v62 = vpack.c.bf16 %v268_v60, %v266_v59  ;;  %v305_v59 = vld [vmem:[#allocation7 + $0x1c0] sm:$0xff]  ;;  %v307_v60 = vld [vmem:[#allocation7 + $0x1d0] sm:$0xff] }
  0x73   :  { %824 = vmatprep.subr.bf16.mxu1 %v823_v63  ;;  %v265_v63 = vld [vmem:[#allocation7 + $0x80] sm:$0xff] }
  0x74   :  { %v865_v3 = vpack.c.bf16 %v267_v0, %v265_v63  ;;  %v312_v63 = vld [vmem:[#allocation7 + $0x1f8] sm:$0xff] }
  0x76   :  { %826 = vmatpush1.bf16.msra.mxu1 %v825_v4  ;;  %v867_v4 = vpack.c.bf16 %v272_v2, %v270_v1  ;;  %v309_v1 = vld [vmem:[#allocation7 + $0x1e0] sm:$0xff]  ;;  %v311_v2 = vld [vmem:[#allocation7 + $0x1f0] sm:$0xff] }
  0x77   :  { %828 = vmatprep.subr.bf16.mxu1 %v827_v5  ;;  %v269_v5 = vld [vmem:[#allocation7 + $0xa0] sm:$0xff] }
  0x78   :  { %v869_v9 = vpack.c.bf16 %v271_v6, %v269_v5  ;;  %v476_v5 = vld [vmem:[%s1415_s7] sm:$0xff]  ;;  %v407_v6 = vld [vmem:[#allocation8 + $0x8] sm:$0xff] }
  0x7a   :  { %830 = vmatpush1.bf16.msra.mxu1 %v829_v10  ;;  %v871_v10 = vpack.c.bf16 %v276_v8, %v274_v7  ;;  %v1160_v7 = vmov 0.0   ;;  %v409_v8 = vld [vmem:[#allocation8 + $0x18] sm:$0xff] }
  0x7b   :  { %832 = vmatprep.subr.bf16.mxu1 %v831_v11  ;;  %v273_v11 = vld [vmem:[#allocation7 + $0xc0] sm:$0xff]  ;;  %549 = vmatprep.mubr.f32.mxu0 %v1160_v7 }
  0x7c   :  { %v873_v15 = vpack.c.bf16 %v275_v12, %v273_v11  ;;  %v911_v11 = vpack.c.bf16 %v409_v8, %v407_v6  ;;  %v449_v6 = vld [vmem:[#allocation8 + $0x158] sm:$0xff] }
  0x7e   :  { %834 = vmatpush1.bf16.msra.mxu1 %v833_v16  ;;  %v875_v16 = vpack.c.bf16 %v280_v14, %v278_v13  ;;  %v408_v13 = vld [vmem:[#allocation8 + $0x10] sm:$0xff]  ;;  %v411_v14 = vld [vmem:[#allocation8 + $0x28] sm:$0xff] }
  0x7f   :  { %836 = vmatprep.subr.bf16.mxu1 %v835_v17  ;;  %v277_v17 = vld [vmem:[#allocation7 + $0xe0] sm:$0xff] }
  0x80   :  { %v877_v21 = vpack.c.bf16 %v279_v18, %v277_v17 }
  0x82   :  { %838 = vmatpush1.bf16.msra.mxu1 %v837_v22  ;;  %v879_v22 = vpack.c.bf16 %v284_v20, %v282_v19  ;;  %v410_v19 = vld [vmem:[#allocation8 + $0x20] sm:$0xff]  ;;  %v412_v20 = vld [vmem:[#allocation8 + $0x30] sm:$0xff] }
  0x83   :  { %840 = vmatprep.subr.bf16.mxu1 %v839_v23  ;;  %v281_v23 = vld [vmem:[#allocation7 + $0x100] sm:$0xff] }
  0x84   :  { %v881_v27 = vpack.c.bf16 %v283_v24, %v281_v23  ;;  %v917_v23 = vpack.c.bf16 %v412_v20, %v410_v19 }
  0x86   :  { %842 = vmatpush1.bf16.msra.mxu1 %v841_v28  ;;  %v883_v28 = vpack.c.bf16 %v288_v26, %v286_v25  ;;  %v414_v25 = vld [vmem:[#allocation8 + $0x40] sm:$0xff]  ;;  %v416_v26 = vld [vmem:[#allocation8 + $0x50] sm:$0xff] }
  0x87   :  { %844 = vmatprep.subr.bf16.mxu1 %v843_v29  ;;  %v285_v29 = vld [vmem:[#allocation7 + $0x120] sm:$0xff] }
  0x88   :  { %v885_v33 = vpack.c.bf16 %v287_v30, %v285_v29  ;;  %v921_v29 = vpack.c.bf16 %v416_v26, %v414_v25 }
  0x8a   :  { %846 = vmatpush1.bf16.msra.mxu1 %v845_v34  ;;  %v887_v34 = vpack.c.bf16 %v292_v32, %v290_v31  ;;  %v418_v31 = vld [vmem:[#allocation8 + $0x60] sm:$0xff]  ;;  %v420_v32 = vld [vmem:[#allocation8 + $0x70] sm:$0xff] }
  0x8b   :  { %848 = vmatprep.subr.bf16.mxu1 %v847_v35  ;;  %v289_v35 = vld [vmem:[#allocation7 + $0x140] sm:$0xff] }
  0x8c   :  { %v889_v39 = vpack.c.bf16 %v291_v36, %v289_v35  ;;  %v925_v35 = vpack.c.bf16 %v420_v32, %v418_v31 }
  0x8d   :  { %233 = vmatmul.mubr.f32.vlgmr.msra.gmra.mrb[0].mxu1 %v88_v40  ;;  %v891_v40 = vpack.c.bf16 %v296_v38, %v294_v37  ;;  %v422_v37 = vld [vmem:[#allocation8 + $0x80] sm:$0xff]  ;;  %v424_v38 = vld [vmem:[#allocation8 + $0x90] sm:$0xff] }
  0x8e   :  { %238 = vmatprep.mubr.f32.mxu1 %v91_v42  ;;  %850 = vmatpush1.bf16.msra.mxu1 %v849_v41  ;;  %v293_v41 = vld [vmem:[#allocation7 + $0x160] sm:$0xff]  ;;  %v295_v42 = vld [vmem:[#allocation7 + $0x170] sm:$0xff] }
  0x8f   :  { %852 = vmatprep.subr.bf16.mxu1 %v851_v43  ;;  %v298_v43 = vld [vmem:[#allocation7 + $0x188] sm:$0xff]  ;;  %v893_v45 = vpack.c.bf16 %v295_v42, %v293_v41  ;;  %v929_v41 = vpack.c.bf16 %v424_v38, %v422_v37  ;;  %v457_v38 = vld [vmem:[#allocation8 + $0x198] sm:$0xff] }
  0x90   :  { %v895_v46 = vpack.c.bf16 %v300_v44, %v298_v43  ;;  %v426_v43 = vld [vmem:[#allocation8 + $0xa0] sm:$0xff]  ;;  %v428_v44 = vld [vmem:[#allocation8 + $0xb0] sm:$0xff]  ;;  %v455_v37 = vld [vmem:[#allocation8 + $0x188] sm:$0xff] }
  0x91   :  { %239 = vmatmul.mubr.f32.gmra.mrb[2].mxu1 %v90_v48  ;;  %v299_v48 = vld [vmem:[#allocation7 + $0x190] sm:$0xff] }
  0x92   :  { %854 = vmatpush1.bf16.msra.mxu1 %v853_v49  ;;  %v302_v49 = vld [vmem:[#allocation7 + $0x1a8] sm:$0xff]  ;;  %v897_v51 = vpack.c.bf16 %v299_v48, %v297_v47  ;;  %v933_v47 = vpack.c.bf16 %v428_v44, %v426_v43  ;;  %v461_v44 = vld [vmem:[#allocation8 + $0x1b8] sm:$0xff] }
  0x93   :  { %856 = vmatprep.subr.bf16.mxu1 %v855_v50  ;;  %v304_v50 = vld [vmem:[#allocation7 + $0x1b8] sm:$0xff]  ;;  %v459_v43 = vld [vmem:[#allocation8 + $0x1a8] sm:$0xff] }
  0x94   :  { %v899_v52 = vpack.c.bf16 %v304_v50, %v302_v49  ;;  %v430_v49 = vld [vmem:[#allocation8 + $0xc0] sm:$0xff]  ;;  %v432_v50 = vld [vmem:[#allocation8 + $0xd0] sm:$0xff] }
  0x95   :  { %v937_v53 = vpack.c.bf16 %v432_v50, %v430_v49  ;;  %v463_v49 = vld [vmem:[#allocation8 + $0x1c8] sm:$0xff]  ;;  %v465_v50 = vld [vmem:[#allocation8 + $0x1d8] sm:$0xff] }
  0x96   :  { %858 = vmatpush1.bf16.msra.mxu1 %v857_v55  ;;  %v306_v55 = vld [vmem:[#allocation7 + $0x1c8] sm:$0xff] }
  0x97   :  { %860 = vmatprep.subr.bf16.mxu1 %v859_v56  ;;  %v308_v56 = vld [vmem:[#allocation7 + $0x1d8] sm:$0xff] }
  0x98   :  { %v903_v58 = vpack.c.bf16 %v308_v56, %v306_v55  ;;  %v434_v55 = vld [vmem:[#allocation8 + $0xe0] sm:$0xff]  ;;  %v436_v56 = vld [vmem:[#allocation8 + $0xf0] sm:$0xff] }
  0x9a   :  { %862 = vmatpush1.bf16.msra.mxu1 %v861_v61  ;;  %v905_v61 = vpack.c.bf16 %v307_v60, %v305_v59  ;;  %v941_v59 = vpack.c.bf16 %v436_v56, %v434_v55  ;;  %v471_v55 = vld [vmem:[%s1409_s1 + $0x8] sm:$0xff] }
  0x9b   :  { %864 = vmatprep.subr.bf16.mxu1 %v863_v62  ;;  %v310_v62 = vld [vmem:[#allocation7 + $0x1e8] sm:$0xff]  ;;  %v780_v56 = vadd.f32 -1.0, %v471_v55 }
  0x9c   :  { %v907_v0 = vpack.c.bf16 %v312_v63, %v310_v62  ;;  %v440_v62 = vld [vmem:[#allocation8 + $0x110] sm:$0xff]  ;;  %v443_v63 = vld [vmem:[#allocation8 + $0x128] sm:$0xff] }
  0x9e   :  { %866 = vmatpush1.bf16.msra.mxu1 %v865_v3  ;;  %v909_v3 = vpack.c.bf16 %v311_v2, %v309_v1 }
  0x9f   :  { %868 = vmatprep.subr.bf16.mxu1 %v867_v4  ;;  %v477_v4 = vld [vmem:[%s1415_s7 + $0x8] sm:$0xff] }
  0xa0   :  { %485 = vmatprep.subr.mxu0 %v477_v4  ;;  %v444_v4 = vld [vmem:[#allocation8 + $0x130] sm:$0xff] }
  0xa1   :  { %486 = vmatpush1.msra.mxu0 %v476_v5  ;;  %v447_v5 = vld [vmem:[#allocation8 + $0x148] sm:$0xff] }
  0xa2   :  { %870 = vmatpush1.bf16.msra.mxu1 %v869_v9  ;;  %v470_v9 = vld [vmem:[%s1409_s1] sm:$0xff]  ;;  %912 = vmatprep.subr.bf16.mxu0 %v911_v11  ;;  %v951_v8 = vpack.c.bf16 %v449_v6, %v447_v5  ;;  %v451_v11 = vld [vmem:[#allocation8 + $0x168] sm:$0xff]  ;;  %s1161_s1 = smov 32  }
  0xa3   :  { %872 = vmatprep.subr.bf16.mxu1 %v871_v10  ;;  %v406_v10 = vld [vmem:[#allocation8] sm:$0xff]  ;;  %v779_v12 = vadd.f32 -1.0, %v470_v9 }
  0xa4   :  { %v446_v9 = vld [vmem:[#allocation8 + $0x140] sm:$0xff] }
  0xa5   :  { %v474_v17 = vmul.f32 1e+30, %v779_v12  ;;  %v453_v12 = vld [vmem:[#allocation8 + $0x178] sm:$0xff] }
  0xa6   :  { %874 = vmatpush1.bf16.msra.mxu1 %v873_v15  ;;  %v413_v15 = vld [vmem:[#allocation8 + $0x38] sm:$0xff] }
  0xa7   :  { %876 = vmatprep.subr.bf16.mxu1 %v875_v16  ;;  %v913_v16 = vpack.c.bf16 %v408_v13, %v406_v10  ;;  %v915_v18 = vpack.c.bf16 %v413_v15, %v411_v14  ;;  %781 = vmatmul.mubr.msk.f32.vlgmr.msra.gmra.mrb[0].mxu0 %vm478_vm0, %v474_v17  ;;  %v448_v10 = vld [vmem:[#allocation8 + $0x150] sm:$0xff]  ;;  %v955_v14 = vpack.c.bf16 %v453_v12, %v451_v11  ;;  %v450_v15 = vld [vmem:[#allocation8 + $0x160] sm:$0xff] }
  0xa8   :  { %555 = vmatprep.mubr.f32.mxu0 %v1160_v7  ;;  %v953_v13 = vpack.c.bf16 %v448_v10, %v446_v9 }
  0xa9   :  { %914 = vmatpush1.bf16.msra.mxu0 %v913_v16  ;;  %v452_v16 = vld [vmem:[#allocation8 + $0x170] sm:$0xff] }
  0xaa   :  { %878 = vmatpush1.bf16.msra.mxu1 %v877_v21  ;;  %v415_v21 = vld [vmem:[#allocation8 + $0x48] sm:$0xff]  ;;  %916 = vmatprep.subr.bf16.mxu0 %v915_v18  ;;  %v957_v17 = vpack.c.bf16 %v452_v16, %v450_v15  ;;  %v158_v18 = vlaneseq }
  0xab   :  { %880 = vmatprep.subr.bf16.mxu1 %v879_v22  ;;  %v417_v22 = vld [vmem:[#allocation8 + $0x58] sm:$0xff] }
  0xac   :  { %v919_v24 = vpack.c.bf16 %v417_v22, %v415_v21  ;;  %v1302_v19 = vshrl.u32 %v158_v18, 7  ;;  %v156_v21 = vld [vmem:[%s1411_s3] sm:$0x3] }
  0xad   :  { %918 = vmatpush1.bf16.msra.mxu0 %v917_v23 }
  0xae   :  { %882 = vmatpush1.bf16.msra.mxu1 %v881_v27  ;;  %v419_v27 = vld [vmem:[#allocation8 + $0x68] sm:$0xff]  ;;  %920 = vmatprep.subr.bf16.mxu0 %v919_v24  ;;  %v160_v20 = vsub.s32 0, %v1302_v19  ;;  %v164_v22 = vsub.s32 1, %v1302_v19 }
  0xaf   :  { %884 = vmatprep.subr.bf16.mxu1 %v883_v28  ;;  %v421_v28 = vld [vmem:[#allocation8 + $0x78] sm:$0xff] }
  0xb0   :  { %v923_v30 = vpack.c.bf16 %v421_v28, %v419_v27  ;;  %v161_v23 = vrot.slane %v156_v21, %v160_v20  ;;  %v165_v24 = vrot.slane %v156_v21, %v164_v22 }
  0xb1   :  { %922 = vmatpush1.bf16.msra.mxu0 %v921_v29 }
  0xb2   :  { %886 = vmatpush1.bf16.msra.mxu1 %v885_v33  ;;  %v423_v33 = vld [vmem:[#allocation8 + $0x88] sm:$0xff]  ;;  %924 = vmatprep.subr.bf16.mxu0 %v923_v30 }
  0xb3   :  { %888 = vmatprep.subr.bf16.mxu1 %v887_v34  ;;  %v425_v34 = vld [vmem:[#allocation8 + $0x98] sm:$0xff] }
  0xb4   :  { %v927_v36 = vpack.c.bf16 %v425_v34, %v423_v33 }
  0xb5   :  { %926 = vmatpush1.bf16.msra.mxu0 %v925_v35 }
  0xb6   :  { %890 = vmatpush1.bf16.msra.mxu1 %v889_v39  ;;  %v427_v39 = vld [vmem:[#allocation8 + $0xa8] sm:$0xff]  ;;  %928 = vmatprep.subr.bf16.mxu0 %v927_v36 }
  0xb7   :  { %892 = vmatprep.subr.bf16.mxu1 %v891_v40  ;;  %v429_v40 = vld [vmem:[#allocation8 + $0xb8] sm:$0xff] }
  0xb8   :  { %v931_v42 = vpack.c.bf16 %v429_v40, %v427_v39  ;;  %v959_v39 = vpack.c.bf16 %v457_v38, %v455_v37  ;;  %v454_v40 = vld [vmem:[#allocation8 + $0x180] sm:$0xff] }
  0xb9   :  { %930 = vmatpush1.bf16.msra.mxu0 %v929_v41  ;;  %v456_v41 = vld [vmem:[#allocation8 + $0x190] sm:$0xff] }
  0xba   :  { %894 = vmatpush1.bf16.msra.mxu1 %v893_v45  ;;  %v431_v45 = vld [vmem:[#allocation8 + $0xc8] sm:$0xff]  ;;  %932 = vmatprep.subr.bf16.mxu0 %v931_v42  ;;  %v961_v42 = vpack.c.bf16 %v456_v41, %v454_v40 }
  0xbb   :  { %896 = vmatprep.subr.bf16.mxu1 %v895_v46  ;;  %v433_v46 = vld [vmem:[#allocation8 + $0xd8] sm:$0xff] }
  0xbc   :  { %v935_v48 = vpack.c.bf16 %v433_v46, %v431_v45  ;;  %v963_v45 = vpack.c.bf16 %v461_v44, %v459_v43  ;;  %v458_v46 = vld [vmem:[#allocation8 + $0x1a0] sm:$0xff]  ;;  %v1337_v44 = vand.u32 127, %v158_v18 }
  0xbd   :  { %934 = vmatpush1.bf16.msra.mxu0 %v933_v47  ;;  %v460_v47 = vld [vmem:[#allocation8 + $0x1b0] sm:$0xff] }
  0xbe   :  { %898 = vmatpush1.bf16.msra.mxu1 %v897_v51  ;;  %v435_v51 = vld [vmem:[#allocation8 + $0xe8] sm:$0xff]  ;;  %936 = vmatprep.subr.bf16.mxu0 %v935_v48  ;;  %v965_v48 = vpack.c.bf16 %v460_v47, %v458_v46  ;;  %vm671_vm1 = vcmp.lt.s32.totalorder %v1337_v44, 32 }
  0xbf   :  { %900 = vmatprep.subr.bf16.mxu1 %v899_v52  ;;  %v437_v52 = vld [vmem:[#allocation8 + $0xf8] sm:$0xff] }
  0xc0   :  { %v939_v54 = vpack.c.bf16 %v437_v52, %v435_v51  ;;  %v967_v51 = vpack.c.bf16 %v465_v50, %v463_v49  ;;  %v462_v52 = vld [vmem:[#allocation8 + $0x1c0] sm:$0xff] }
  0xc1   :  { %938 = vmatpush1.bf16.msra.mxu0 %v937_v53  ;;  %v464_v53 = vld [vmem:[#allocation8 + $0x1d0] sm:$0xff] }
  0xc2   :  { %902 = vmatpush1.bf16.msra.mxu1 %v901_v57  ;;  %v439_v57 = vld [vmem:[#allocation8 + $0x108] sm:$0xff]  ;;  %940 = vmatprep.subr.bf16.mxu0 %v939_v54  ;;  %v969_v54 = vpack.c.bf16 %v464_v53, %v462_v52 }
  0xc3   :  { %904 = vmatprep.subr.bf16.mxu1 %v903_v58  ;;  %v441_v58 = vld [vmem:[#allocation8 + $0x118] sm:$0xff] }
  0xc4   :  { %v943_v60 = vpack.c.bf16 %v441_v58, %v439_v57  ;;  %v467_v57 = vld [vmem:[#allocation8 + $0x1e8] sm:$0xff]  ;;  %v469_v58 = vld [vmem:[#allocation8 + $0x1f8] sm:$0xff] }
  0xc5   :  { %942 = vmatpush1.bf16.msra.mxu0 %v941_v59  ;;  %v466_v59 = vld [vmem:[#allocation8 + $0x1e0] sm:$0xff] }
  0xc6   :  { %906 = vmatpush1.bf16.msra.mxu1 %v905_v61  ;;  %v438_v61 = vld [vmem:[#allocation8 + $0x100] sm:$0xff]  ;;  %944 = vmatprep.subr.bf16.mxu0 %v943_v60  ;;  %v971_v60 = vpack.c.bf16 %v469_v58, %v467_v57 }
  0xc7   :  { %908 = vmatprep.subr.bf16.mxu1 %v907_v0  ;;  %v445_v0 = vld [vmem:[#allocation8 + $0x138] sm:$0xff]  ;;  %v945_v1 = vpack.c.bf16 %v440_v62, %v438_v61  ;;  %v468_v61 = vld [vmem:[#allocation8 + $0x1f0] sm:$0xff]  ;;  %v475_v62 = vmul.f32 1e+30, %v780_v56 }
  0xc8   :  { %v947_v2 = vpack.c.bf16 %v445_v0, %v443_v63  ;;  %v973_v63 = vpack.c.bf16 %v468_v61, %v466_v59  ;;  %v313_v0 = vld [vmem:[%s1413_s5] sm:$0x3]  ;;  %s1162_s5 = smov 64  }
  0xc9   :  { %946 = vmatpush1.bf16.msra.mxu0 %v945_v1  ;;  %v318_v1 = vrot.slane %v313_v0, %v160_v20 }
  0xca   :  { %910 = vmatpush1.bf16.msra.mxu1 %v909_v3  ;;  %v442_v3 = vld [vmem:[#allocation8 + $0x120] sm:$0xff]  ;;  %948 = vmatprep.subr.bf16.mxu0 %v947_v2  ;;  %v322_v2 = vrot.slane %v313_v0, %v164_v22 }
  0xcb   :  { %v949_v7 = vpack.c.bf16 %v444_v4, %v442_v3  ;;  %782 = vmatmul.mubr.msk.f32.gmra.mrb[2].mxu0 %vm478_vm0, %v475_v62 }
  0xcd   :  { %950 = vmatpush1.bf16.msra.mxu0 %v949_v7 }
  0xce   :  { %952 = vmatprep.subr.bf16.mxu0 %v951_v8 }
  0xd1   :  { %954 = vmatpush1.bf16.msra.mxu0 %v953_v13 }
  0xd2   :  { %956 = vmatprep.subr.bf16.mxu0 %v955_v14 }
  0xd5   :  { %958 = vmatpush1.bf16.msra.mxu0 %v957_v17 }
  0xd6   :  { %960 = vmatprep.subr.bf16.mxu0 %v959_v39 }
  0xd9   :  { %962 = vmatpush1.bf16.msra.mxu0 %v961_v42 }
  0xda   :  { %964 = vmatprep.subr.bf16.mxu0 %v963_v45 }
  0xdd   :  { %966 = vmatpush1.bf16.msra.mxu0 %v965_v48 }
  0xde   :  { %968 = vmatprep.subr.bf16.mxu0 %v967_v51 }
  0xe1   :  { %970 = vmatpush1.bf16.msra.mxu0 %v969_v54 }
  0xe2   :  { %972 = vmatprep.subr.bf16.mxu0 %v971_v60 }
  0xe5   :  { %974 = vmatpush1.bf16.msra.mxu0 %v973_v63 }
 0x160   :  { %v234_v25 = vpop.f32.mrb[0].mxu1 }
 0x161   :  { %v235_v26 = vadd.f32 %v234_v25, %v161_v23  ;;  %v236_v27 = vpop.f32.mrb[1].mxu1 }
 0x162   :  { %v237_v28 = vadd.f32 %v236_v27, %v165_v24 }
 0x163   :  { %v1309_v29 = vmax.f32 %v235_v26, 0.0 }
 0x164   :  { %v1311_v30 = vmax.f32 %v237_v28, 0.0  ;;  %v240_v31 = vpop.f32.mrb[2].mxu1 }
 0x165   :  { %737 = vst [vmem:[#allocation10] sm:$0xff] %v1309_v29  ;;  %v241_v32 = vadd.f32 %v240_v31, %v161_v23  ;;  %v242_v33 = vpop.f32.mrb[3].mxu1 }
 0x166   :  { %738 = vst [vmem:[#allocation10 + $0x8] sm:$0xff] %v1311_v30  ;;  %v243_v34 = vadd.f32 %v242_v33, %v165_v24  ;;  %389 = vmatprep.mubr.f32.mxu1 %v1311_v30 }
 0x167   :  { %v1316_v35 = vmax.f32 %v241_v32, 0.0  ;;  %390 = vmatmul.mubr.f32.vlgmr.msra.gmra.mrb[4].mxu1 %v1309_v29 }
 0x168   :  { %v1319_v36 = vmax.f32 %v243_v34, 0.0 }
 0x169   :  { %739 = vst [vmem:[#allocation10 + $0x10] sm:$0xff] %v1316_v35 }
 0x16a   :  { %740 = vst [vmem:[#allocation10 + $0x18] sm:$0xff] %v1319_v36  ;;  %395 = vmatprep.mubr.f32.mxu1 %v1319_v36 }
 0x16b   :  { %396 = vmatmul.mubr.f32.gmra.mrb[6].mxu1 %v1316_v35 }
 0x23a   :  { %v391_v3 = vpop.f32.mrb[4].mxu1 }
 0x23b   :  { %v392_v4 = vadd.f32 %v391_v3, %v318_v1  ;;  %v393_v5 = vpop.f32.mrb[5].mxu1 }
 0x23c   :  { %v394_v6 = vadd.f32 %v393_v5, %v322_v2 }
 0x23e   :  { %992 = vtanh.f32 %v394_v6  ;;  %v397_v7 = vpop.f32.mrb[6].mxu1 }
 0x23f   :  { %994 = vtanh.f32 %v392_v4  ;;  %v398_v8 = vadd.f32 %v397_v7, %v318_v1  ;;  %v399_v9 = vpop.f32.mrb[7].mxu1 }
 0x240   :  { %v400_v10 = vadd.f32 %v399_v9, %v322_v2 }
 0x241   :  { %996 = vtanh.f32 %v398_v8 }
 0x242   :  { %998 = vtanh.f32 %v400_v10 }
 0x248   :  { %v993_v11 = vpop.eup %992 }
 0x249   :  { %v995_v12 = vpop.eup %994  ;;  %626 = vmatprep.mubr.f32.mxu0 %v993_v11 }
 0x24a   :  { %627 = vmatmul.mubr.f32.vlgmr.msra.gmra.mrb[0].mxu0 %v995_v12 }
 0x24b   :  { %v997_v13 = vpop.eup %996 }
 0x24c   :  { %v999_v14 = vpop.eup %998 }
 0x24d   :  { %632 = vmatprep.mubr.f32.mxu0 %v999_v14 }
 0x24e   :  { %633 = vmatmul.mubr.f32.gmra.mrb[2].mxu0 %v997_v13 }
 0x31d   :  { %v628_v15 = vpop.f32.mrb[0].mxu0 }
 0x31e   :  { %v630_v16 = vpop.f32.mrb[1].mxu0 }
 0x31f   :  { %v639_v17 = vmax.f32 %v628_v15, %v630_v16 }
 0x321   :  { %640 = vmax.xlane.f32.xlu0 %v639_v17  ;;  %v634_v19 = vpop.f32.mrb[2].mxu0 }
 0x322   :  { %v636_v20 = vpop.f32.mrb[3].mxu0 }
 0x323   :  { %v642_v21 = vmax.f32 %v634_v19, %v636_v20 }
 0x325   :  { %643 = vmax.xlane.f32.xlu0 %v642_v21 }
 0x3ae   :  { %v641_v22 = vpop.xlane.xlu0 %640 }
 0x3af   :  { %v645_v23 = vsub.f32 %v628_v15, %v641_v22  ;;  %v646_v24 = vsub.f32 %v630_v16, %v641_v22 }
 0x3b1   :  { %v649_v25 = vmul.f32 1.442695, %v645_v23  ;;  %v651_v26 = vmul.f32 1.442695, %v646_v24 }
 0x3b2   :  { %v644_v27 = vpop.xlane.xlu0 %643 }
 0x3b3   :  { %1000 = vpow2.f32 %v649_v25  ;;  %v647_v28 = vsub.f32 %v634_v19, %v644_v27  ;;  %v648_v31 = vsub.f32 %v636_v20, %v644_v27 }
 0x3b4   :  { %1002 = vpow2.f32 %v651_v26 }
 0x3b5   :  { %v653_v32 = vmul.f32 1.442695, %v647_v28  ;;  %v655_v33 = vmul.f32 1.442695, %v648_v31 }
 0x3b7   :  { %1004 = vpow2.f32 %v653_v32 }
 0x3b8   :  { %1006 = vpow2.f32 %v655_v33 }
 0x3bd   :  { %v1001_v34 = vpop.eup %1000 }
 0x3be   :  { %v1003_v37 = vpop.eup %1002  ;;  %680 = vrot.lane.b32.xlu1 %v1001_v34, %s1161_s1  ;;  %v657_v38 = vmul.f32 %v1001_v34, %v1309_v29 }
 0x3bf   :  { %684 = vrot.lane.b32.xlu0 %v1003_v37, %s1161_s1  ;;  %v658_v41 = vmul.f32 %v1003_v37, %v1311_v30 }
 0x3c1   :  { %v1005_v39 = vpop.eup %1004 }
 0x3c2   :  { %661 = vrot.lane.b32.xlu1 %v657_v38, %s1161_s1  ;;  %v1007_v40 = vpop.eup %1006  ;;  %v659_v42 = vmul.f32 %v1005_v39, %v1316_v35 }
 0x3c3   :  { %v660_v43 = vmul.f32 %v1007_v40, %v1319_v36 }
 0x3c6   :  { %682 = vrot.lane.b32.xlu1 %v1005_v39, %s1161_s1 }
 0x3ca   :  { %686 = vrot.lane.b32.xlu1 %v1007_v40, %s1161_s1 }
 0x3ce   :  { %665 = vrot.lane.b32.xlu1 %v658_v41, %s1161_s1 }
 0x3d2   :  { %663 = vrot.lane.b32.xlu1 %v659_v42, %s1161_s1 }
 0x3d6   :  { %667 = vrot.lane.b32.xlu1 %v660_v43, %s1161_s1 }
 0x430   :  { %v681_v29 = vpop.permute.xlu1 %680 }
 0x431   :  { %v685_v45 = vpop.permute.xlu0 %684 }
 0x432   :  { %v690_v46 = vsel %vm671_vm1, %v685_v45, %v681_v29  ;;  %v688_v30 = vsel %vm671_vm1, %v681_v29, %v685_v45 }
 0x433   :  { %v692_v47 = vadd.f32 %v1001_v34, %v690_v46  ;;  %v693_v35 = vadd.f32 %v1003_v37, %v688_v30 }
 0x434   :  { %v662_v48 = vpop.permute.xlu1 %661 }
 0x435   :  { %713 = vrot.lane.b32.xlu1 %v692_v47, %s1162_s5 }
 0x438   :  { %v683_v36 = vpop.permute.xlu1 %682 }
 0x439   :  { %717 = vrot.lane.b32.xlu1 %v693_v35, %s1162_s5 }
 0x43c   :  { %v687_v18 = vpop.permute.xlu1 %686 }
 0x43d   :  { %v691_v49 = vsel %vm671_vm1, %v687_v18, %v683_v36  ;;  %v689_v51 = vsel %vm671_vm1, %v683_v36, %v687_v18 }
 0x43e   :  { %v694_v50 = vadd.f32 %v1005_v39, %v691_v49  ;;  %v695_v54 = vadd.f32 %v1007_v40, %v689_v51 }
 0x440   :  { %715 = vrot.lane.b32.xlu0 %v694_v50, %s1162_s5  ;;  %v666_v52 = vpop.permute.xlu1 %665 }
 0x441   :  { %v674_v53 = vsel %vm671_vm1, %v666_v52, %v662_v48  ;;  %v672_v56 = vsel %vm671_vm1, %v662_v48, %v666_v52 }
 0x442   :  { %v676_v55 = vadd.f32 %v674_v53, %v657_v38  ;;  %v677_v58 = vadd.f32 %v672_v56, %v658_v41 }
 0x444   :  { %719 = vrot.lane.b32.xlu0 %v695_v54, %s1162_s5  ;;  %v664_v57 = vpop.permute.xlu1 %663  ;;  %696 = vrot.lane.b32.xlu1 %v676_v55, %s1162_s5 }
 0x448   :  { %v668_v59 = vpop.permute.xlu1 %667  ;;  %700 = vrot.lane.b32.xlu1 %v677_v58, %s1162_s5 }
 0x449   :  { %v675_v60 = vsel %vm671_vm1, %v668_v59, %v664_v57  ;;  %v673_v62 = vsel %vm671_vm1, %v664_v57, %v668_v59 }
 0x44a   :  { %v678_v61 = vadd.f32 %v675_v60, %v659_v42 }
 0x44b   :  { %1111 = shalt.err (!%p1108_p8)
}
 0x44c   :  { %s1112_s30 = scalar_lea.hbm %s1416_s8, 512 }
 0x44d   :  { %p1113_p9 = scmp.ne.s32.totalorder %s1416_s8, %s1112_s30  ;;  %p1116_p10 = scmp.lt.u32.totalorder %s1112_s30, %s1416_s8 }
 0x44f   :  { %p1118_p11 = pnand %p1116_p10, %p1113_p9 }
 0x451   :  { %1121 = shalt.err (!%p1118_p11)
}
 0x452   :  { %755 = dma.vmem_to_hbm [thread:$0]  %s750_s12, 512, %s1416_s8, [#allocation4], %s1156_s21, %s1156_s21, %s1157_s22   ;;  %v679_v63 = vadd.f32 %v673_v62, %v660_v43  ;;  %vm704_vm2 = vcmp.lt.s32.totalorder %v1337_v44, 64  ;;  %vm741_vm3 = vcmask 261120  }
 0x453   :  { %698 = vrot.lane.b32.xlu0 %v678_v61, %s1162_s5  ;;  %s1164_s8 = smov [#allocation11]  }
 0x454   :  { %s761_s21 = sshll.u32 %s1164_s8, 4  ;;  %s762_s21 = int_to_ptr.vmem [resolvable:$true] %s761_s21 }
 0x455   :  { %s1122_s22 = scalar_lea.vmem %s762_s21, 256  ;;  %p1127_p13 = scmp.lt.s32.totalorder %s762_s21, %s762_s21 }
 0x456   :  { %p1123_p12 = scmp.ne.s32.totalorder %s762_s21, %s1122_s22  ;;  %p1128_p0 = scmp.lt.s32.totalorder %s1122_s22, %s1122_s22 }
 0x457   :  { %702 = vrot.lane.b32.xlu0 %v679_v63, %s1162_s5 }
 0x458   :  { %p1129_p1 = por %p1128_p0, %p1127_p13 }
 0x45a   :  { %p1130_p2 = pnand %p1129_p1, %p1123_p12 }
 0x4a7   :  { %v714_v0 = vpop.permute.xlu1 %713 }
 0x4ab   :  { %v718_v1 = vpop.permute.xlu1 %717 }
 0x4ac   :  { %v721_v2 = vsel %vm704_vm2, %v714_v0, %v718_v1  ;;  %v723_v3 = vsel %vm704_vm2, %v718_v1, %v714_v0 }
 0x4ad   :  { %v725_v4 = vadd.f32 %v723_v3, %v692_v47  ;;  %v726_v5 = vadd.f32 %v721_v2, %v693_v35 }
 0x4af   :  { %v731_v6 = vadd.f32 %v726_v5, %v725_v4 }
 0x4b1   :  { %1008 = vrcp.f32 %v731_v6 }
 0x4b2   :  { %v716_v7 = vpop.permute.xlu0 %715 }
 0x4b6   :  { %v697_v8 = vpop.permute.xlu1 %696  ;;  %v720_v9 = vpop.permute.xlu0 %719 }
 0x4b7   :  { %v722_v10 = vsel %vm704_vm2, %v716_v7, %v720_v9  ;;  %v724_v11 = vsel %vm704_vm2, %v720_v9, %v716_v7 }
 0x4b8   :  { %v727_v12 = vadd.f32 %v724_v11, %v694_v50  ;;  %v728_v13 = vadd.f32 %v722_v10, %v695_v54 }
 0x4ba   :  { %v732_v14 = vadd.f32 %v728_v13, %v727_v12  ;;  %v701_v15 = vpop.permute.xlu1 %700 }
 0x4bb   :  { %v705_v16 = vsel %vm704_vm2, %v697_v8, %v701_v15  ;;  %v707_v17 = vsel %vm704_vm2, %v701_v15, %v697_v8  ;;  %v1009_v23 = vpop.eup %1008 }
 0x4bc   :  { %1010 = vrcp.f32 %v732_v14  ;;  %v709_v19 = vadd.f32 %v707_v17, %v676_v55  ;;  %v710_v20 = vadd.f32 %v705_v16, %v677_v58 }
 0x4be   :  { %v729_v21 = vadd.f32 %v710_v20, %v709_v19 }
 0x4c0   :  { %v735_v24 = vmul.f32 %v1009_v23, %v729_v21 }
 0x4c2   :  { %742 = vst.msk [vmem:[#allocation11] sm:$0xff] %vm741_vm3, %v735_v24 }
 0x4c5   :  { %v699_v22 = vpop.permute.xlu0 %698 }
 0x4c6   :  { %v1011_v32 = vpop.eup %1010 }
 0x4c9   :  { %v703_v25 = vpop.permute.xlu0 %702 }
 0x4ca   :  { %v706_v26 = vsel %vm704_vm2, %v699_v22, %v703_v25  ;;  %v708_v27 = vsel %vm704_vm2, %v703_v25, %v699_v22 }
 0x4cb   :  { %v711_v28 = vadd.f32 %v708_v27, %v678_v61  ;;  %v712_v31 = vadd.f32 %v706_v26, %v679_v63 }
 0x4cd   :  { %v730_v33 = vadd.f32 %v712_v31, %v711_v28 }
 0x4cf   :  { %v736_v34 = vmul.f32 %v1011_v32, %v730_v33 }
 0x4d1   :  { %743 = vst.msk [vmem:[#allocation11 + $0x8] sm:$0xff] %vm741_vm3, %v736_v34 }
 0x4d2   :  { %1133 = shalt.err (!%p1130_p2)
}
 0x4d3   :  { %s1134_s16 = scalar_lea.hbm %s1417_s9, 256 }
 0x4d4   :  { %p1135_p3 = scmp.ne.s32.totalorder %s1417_s9, %s1134_s16  ;;  %p1138_p4 = scmp.lt.u32.totalorder %s1134_s16, %s1417_s9 }
 0x4d6   :  { %p1140_p5 = pnand %p1138_p4, %p1135_p3 }
 0x4d8   :  { %1143 = shalt.err (!%p1140_p5)
}
 0x4d9   :  { %s1165_s7 = smov 128   ;;  %s1166_s23 = smov 8  }
 0x4da   :  { %767 = dma.vmem_to_hbm [thread:$0]  %s762_s21, 256, %s1417_s9, [#allocation12], %s1165_s7, %s1165_s7, %s1166_s23  }
 0x4db   :  { %1150 = dma.done.wait [#allocation4], 512  }
 0x4dc   :  { %1151 = vsyncadd [#allocation4], 4294966784 }
 0x4dd   :  { %1152 = dma.done.wait [#allocation12], 256  }
 0x4de   :  { %1153 = vsyncadd [#allocation12], 4294967040 }
 0x4df   :  { %774 = vsyncpa [#allocation3], 1 }
 0x4e0   :  { %775 = vsyncpa [#allocation6], 1 }
 0x4e1   :  { %776 = vsyncpa [#allocation9], 1 }
 0x4e2   :  { %777 = vsyncpa [#allocation4], 1 }
 0x4e3   :  { %778 = vsyncpa [#allocation12], 1 }

</bundles_post_ra>
